<compile_context>
chip_gen: v6e
topology: v6e:2x2x1
jax: 0.10.0
libtpu: 0.0.40
codegen_flags: <defaults>
</compile_context>

<pallas_src>
import functools

import jax
import jax.numpy as jnp
from jax.experimental import pallas as pl
from jax.experimental.pallas import tpu as pltpu

_MIB = 1024 * 1024


def _label_smooth_ce_kernel(x_ref, t_ref, partial_ref, *,
                            epsilon, num_classes, batch, block_rows):
    i = pl.program_id(0)

    x = x_ref[...].astype(jnp.float32)        # (TB, K) logits, f32 compute
    t = t_ref[...]                            # (TB, 1) int32 class ids

    # Numerically stable log-softmax pieces (per row).
    m = jnp.max(x, axis=1, keepdims=True)                              # (TB,1)
    shifted = x - m                                                    # (TB,K)
    lse = jnp.log(jnp.sum(jnp.exp(shifted), axis=1, keepdims=True))    # (TB,1)

    # Fused weighted reduce:
    #   sum_k smoothed_ik * log_probs_ik = sum_k w_ik * shifted_ik - lse_i
    #   with w_ik = eps/K + (1-eps)*[k == t_i]  (assumes t_i in [0, K)).
    k = float(num_classes)
    off_w = epsilon / k
    on_w = 1.0 - epsilon + off_w
    class_ids = jax.lax.broadcasted_iota(jnp.int32, x.shape, 1)        # (TB,K)
    w = jnp.where(class_ids == t, on_w, off_w)                         # (TB,K)
    row = jnp.sum(w * shifted, axis=1, keepdims=True) - lse            # (TB,1)

    # Mask rows past the true batch size (padded final tile).  Keep this as a
    # select so NaN/Inf computed on garbage padding is dropped, not scaled.
    row_ids = i * block_rows + jax.lax.broadcasted_iota(jnp.int32, row.shape, 0)
    row = jnp.where(row_ids < batch, row, 0.0)

    partial_ref[0, 0] = jnp.sum(row)


def _vmem_plan():
    """Returns (per_grid_step_byte_budget, vmem_limit_bytes) per generation."""
    phys = None
    try:
        phys = getattr(pltpu.get_tpu_info(), "vmem_capacity_bytes", None)
    except Exception:
        phys = None
    if not phys:
        phys = 64 * _MIB                      # assume the smallest (v7x-like)
    # Scoped limit: at most half of physical VMEM, never above 64 MiB.
    limit = int(min(phys // 2, 64 * _MIB))
    # Leave ~25% slack under the scoped limit for compiler scratch / pipeline.
    budget = (limit * 3) // 4
    return budget, limit


def _choose_block_rows(batch, num_classes, itemsize, budget_bytes):
    """Byte-targeted row-tile size; accounts for in-kernel f32 temporaries."""
    # Per tile row per grid step:
    #   2 * K * itemsize : double-buffered input DMA slabs
    #   4 * K * 4        : conservative live set of f32 temporaries
    #                      (cast, shifted, weights, weighted product)
    per_row = num_classes * (2 * itemsize + 4 * 4)
    mult = 16 if itemsize < 4 else 8          # bf16 packs 2 rows per sublane
    tb = max(mult, (budget_bytes // max(1, per_row)) // mult * mult)
    if batch >= 2 * mult:
        # Guarantee >=2 grid steps so "parallel" can use both v7x TensorCores.
        half = pl.cdiv(batch, 2)
        half = pl.cdiv(half, mult) * mult
        tb = min(tb, half)
    else:
        tb = min(tb, mult)
    return int(tb)


def cross_entropy_label_smooth(inputs, targets, num_classes, epsilon=0.1,
                               block_rows=None):
    """Label-smoothed cross entropy (mean over batch, sum over classes).

    inputs : (B, num_classes) logits, float32 or bfloat16.  Feeding bf16
             halves HBM traffic (the kernel up-casts and computes in f32).
    targets: (B,) integer class ids in [0, num_classes).
    """
    B, K = inputs.shape
    assert K == num_classes
    targets_2d = targets.astype(jnp.int32).reshape(B, 1)

    budget, vmem_limit = _vmem_plan()
    if block_rows is None:
        block_rows = _choose_block_rows(
            B, K, jnp.dtype(inputs.dtype).itemsize, budget)
    tb = int(block_rows)
    num_tiles = pl.cdiv(B, tb)

    kernel = functools.partial(
        _label_smooth_ce_kernel,
        epsilon=float(epsilon), num_classes=K, batch=B, block_rows=tb)

    partials = pl.pallas_call(
        kernel,
        out_shape=jax.ShapeDtypeStruct((num_tiles, 1), jnp.float32),
        grid=(num_tiles,),
        in_specs=[
            pl.BlockSpec((tb, K), lambda i: (i, 0)),   # logits tile  -> VMEM
            pl.BlockSpec((tb, 1), lambda i: (i, 0)),   # targets tile -> VMEM
        ],
        out_specs=pl.BlockSpec((1, 1), lambda i: (i, 0),
                               memory_space=pltpu.MemorySpace.SMEM),
        compiler_params=pltpu.CompilerParams(
            dimension_semantics=("parallel",),
            vmem_limit_bytes=vmem_limit),
    )(inputs, targets_2d)

    # Single scalar finalize: negation + mean over batch.
    return -jnp.sum(partials) / B


def _reference(inputs, targets, num_classes, epsilon=0.1):
    log_probs = jax.nn.log_softmax(inputs.astype(jnp.float32), axis=1)
    onehot = jax.nn.one_hot(targets, num_classes, dtype=jnp.float32)
    smoothed = (1.0 - epsilon) * onehot + epsilon / num_classes
    return jnp.sum(jnp.mean(-smoothed * log_probs, axis=0))


if __name__ == "__main__":
    key = jax.random.PRNGKey(0)
    k1, k2, k3, k4, k5, k6 = jax.random.split(key, 6)

    # Case 1: small shape, single block covering the full batch.
    B1, K1 = 8, 16
    x1 = jax.random.normal(k1, (B1, K1), dtype=jnp.float32)
    t1 = jax.random.randint(k2, (B1,), 0, K1, dtype=jnp.int32)
    loss1 = jax.block_until_ready(cross_entropy_label_smooth(x1, t1, K1, 0.1))
    ref1 = _reference(x1, t1, K1, 0.1)
    assert jnp.allclose(loss1, ref1, atol=1e-5, rtol=1e-5), (loss1, ref1)

    # Case 2: batch-tiled path with a padded final tile
    # (B=20, TB=8 -> 3 grid steps, last tile half-masked).
    B2, K2 = 20, 64
    x2 = jax.random.normal(k3, (B2, K2), dtype=jnp.float32)
    t2 = jax.random.randint(k4, (B2,), 0, K2, dtype=jnp.int32)
    loss2 = jax.block_until_ready(
        cross_entropy_label_smooth(x2, t2, K2, 0.1, block_rows=8))
    ref2 = _reference(x2, t2, K2, 0.1)
    assert jnp.allclose(loss2, ref2, atol=1e-5, rtol=1e-5), (loss2, ref2)

    # Case 3: bf16 logits, automatic tile choice (16-row tiles, >=2 grid steps).
    B3, K3 = 32, 128
    x3 = jax.random.normal(k5, (B3, K3), dtype=jnp.float32).astype(jnp.bfloat16)
    t3 = jax.random.randint(k6, (B3,), 0, K3, dtype=jnp.int32)
    loss3 = jax.block_until_ready(cross_entropy_label_smooth(x3, t3, K3, 0.1))
    ref3 = _reference(x3, t3, K3, 0.1)
    assert jnp.allclose(loss3, ref3, atol=1e-4, rtol=1e-4), (loss3, ref3)

    print("KERNEL_OK")
</pallas_src>

<mosaic_0001>
module attributes {stable_mosaic.version = 11 : i64} {
  func.func @_label_smooth_ce_kernel(%arg0: i32, %arg1: memref<8x16xf32, #tpu.memory_space<vmem>>, %arg2: memref<8x1xi32, #tpu.memory_space<vmem>>, %arg3: memref<1x1xf32, #tpu.memory_space<smem>>) attributes {dimension_semantics = [#tpu.dimension_semantics<parallel>], iteration_bounds = array<i64: 1>, scalar_prefetch = 0 : i64, scratch_operands = 0 : i64, tpu.core_type = #tpu.core_type<tc>, window_params = [{transform_indices = @transform_0, window_bounds = array<i64: 8, 16>}, {transform_indices = @transform_1, window_bounds = array<i64: 8, 1>}, {transform_indices = @transform_2, window_bounds = array<i64: 1, 1>}]} {
    %c0 = arith.constant 0 : index
    %c0_0 = arith.constant 0 : index
    %0 = vector.load %arg1[%c0, %c0_0] : memref<8x16xf32, #tpu.memory_space<vmem>>, vector<8x16xf32>
    %c0_1 = arith.constant 0 : index
    %c0_2 = arith.constant 0 : index
    %1 = vector.load %arg2[%c0_1, %c0_2] : memref<8x1xi32, #tpu.memory_space<vmem>>, vector<8x1xi32>
    %cst = arith.constant dense<0xFF800000> : vector<8xf32>
    %2 = vector.multi_reduction <maximumf>, %0, %cst [1] : vector<8x16xf32> to vector<8xf32>
    %3 = vector.shape_cast %2 : vector<8xf32> to vector<8x1xf32>
    %4 = vector.broadcast %3 : vector<8x1xf32> to vector<8x16xf32>
    %5 = arith.subf %0, %4 : vector<8x16xf32>
    %6 = math.exp %5 : vector<8x16xf32>
    %cst_3 = arith.constant dense<0.000000e+00> : vector<8xf32>
    %7 = vector.multi_reduction <add>, %6, %cst_3 [1] : vector<8x16xf32> to vector<8xf32>
    %8 = vector.shape_cast %7 : vector<8xf32> to vector<8x1xf32>
    %9 = math.log %8 : vector<8x1xf32>
    %10 = tpu.iota {dimensions = array<i32: 1>} : vector<8x16xi32>
    %11 = vector.broadcast %1 : vector<8x1xi32> to vector<8x16xi32>
    %12 = arith.cmpi eq, %10, %11 : vector<8x16xi32>
    %cst_4 = arith.constant 9.062500e-01 : f32
    %cst_5 = arith.constant 6.250000e-03 : f32
    %13 = vector.broadcast %cst_4 : f32 to vector<8x16xf32>
    %14 = vector.broadcast %cst_5 : f32 to vector<8x16xf32>
    %15 = arith.select %12, %13, %14 : vector<8x16xi1>, vector<8x16xf32>
    %16 = arith.mulf %15, %5 : vector<8x16xf32>
    %cst_6 = arith.constant dense<0.000000e+00> : vector<8xf32>
    %17 = vector.multi_reduction <add>, %16, %cst_6 [1] : vector<8x16xf32> to vector<8xf32>
    %18 = vector.shape_cast %17 : vector<8xf32> to vector<8x1xf32>
    %19 = arith.subf %18, %9 : vector<8x1xf32>
    %c8_i32 = arith.constant 8 : i32
    %20 = arith.muli %arg0, %c8_i32 : i32
    %21 = tpu.iota {dimensions = array<i32: 0>} : vector<8x1xi32>
    %22 = vector.broadcast %20 : i32 to vector<8x1xi32>
    %23 = arith.addi %22, %21 : vector<8x1xi32>
    %c8_i32_7 = arith.constant 8 : i32
    %24 = vector.broadcast %c8_i32_7 : i32 to vector<8x1xi32>
    %25 = arith.cmpi slt, %23, %24 : vector<8x1xi32>
    %cst_8 = arith.constant 0.000000e+00 : f32
    %26 = vector.broadcast %cst_8 : f32 to vector<8x1xf32>
    %27 = arith.select %25, %19, %26 : vector<8x1xi1>, vector<8x1xf32>
    %28 = vector.shape_cast %27 : vector<8x1xf32> to vector<1x8x1xf32>
    %cst_9 = arith.constant dense<0.000000e+00> : vector<1xf32>
    %29 = vector.multi_reduction <add>, %28, %cst_9 [1, 2] : vector<1x8x1xf32> to vector<1xf32>
    %30 = vector.shape_cast %29 : vector<1xf32> to vector<1x1x1xf32>
    %31 = vector.extract %30[0, 0, 0] : f32 from vector<1x1x1xf32>
    %c0_10 = arith.constant 0 : index
    %c0_11 = arith.constant 0 : index
    %32 = memref.load %arg3[%c0_10, %c0_11] : memref<1x1xf32, #tpu.memory_space<smem>>
    memref.store %31, %arg3[%c0_10, %c0_11] : memref<1x1xf32, #tpu.memory_space<smem>>
    return
  }
  func.func @transform_0(%arg0: i32) -> (i32, i32) {
    %c0_i32 = arith.constant 0 : i32
    %c0_i32_0 = arith.constant 0 : i32
    return %arg0, %c0_i32 : i32, i32
  }
  func.func @transform_1(%arg0: i32) -> (i32, i32) {
    %c0_i32 = arith.constant 0 : i32
    %c0_i32_0 = arith.constant 0 : i32
    return %arg0, %c0_i32 : i32, i32
  }
  func.func @transform_2(%arg0: i32) -> (i32, i32) {
    %c0_i32 = arith.constant 0 : i32
    %c0_i32_0 = arith.constant 0 : i32
    return %arg0, %c0_i32 : i32, i32
  }
}

</mosaic_0001>

<bundles_post_ra>
// kernel: tpu_custom_call.1
= control target key start
LH: loop header
LB: loop body
LE: loop exit
PB: predicated region body
PF: predicated region fallthrough
CT: control target
= control target key end

     0   :  { %vm14_vm0 = vcmask 130048   ;;  %s121_s0 = inlined_call_operand.vmem [shape: f32[8,16], index: 0, kind: input, shape index: {}]   ;;  %s122_s1 = inlined_call_operand.vmem [shape: s32[8,1], index: 1, kind: input, shape index: {}]   ;;  %s123_s2 = inlined_call_operand.hbm [shape: f32[1,1], index: 2, kind: output, shape index: {}]  }
   0x1   :  { %v12_v0 = vld [vmem:[%s121_s0] sm:$0xff] }
   0x2   :  { %7 = vsyncpa [#allocation3], 0  ;;  %v15_v1 = vsel %vm14_vm0, %v12_v0, -inf  ;;  %v91_v2 = vmov 0   ;;  %v13_v3 = vld [vmem:[%s122_s1] sm:$0xff]  ;;  %v26_v7 = vlaneseq  ;;  %vm45_vm2 = vcmask 7168  }
   0x3   :  { %76 = vset.pattern.permute.xlu0 %v91_v2  ;;  %v92_v10 = vmov 0.00625   ;;  %s93_s1 = smov [#allocation2]  }
   0x4   :  { %16 = vmax.xlane.f32.xlu0 %v15_v1  ;;  %v27_v8 = vand.u32 127, %v26_v7 }
  0x1a   :  { %29 = vperm.xlu0 %76, %v13_v3  }
  0x8d   :  { %v17_v4 = vpop.xlane.xlu0 %16 }
  0x8e   :  { %v18_v5 = vsub.f32 %v12_v0, %v17_v4 }
  0x90   :  { %v19_v6 = vmul.f32 1.442695, %v18_v5 }
  0x92   :  { %77 = vpow2.f32 %v19_v6 }
  0x95   :  { %v30_v9 = vpop.permute.xlu0 %29 }
  0x96   :  { %vm31_vm1 = vcmp.eq.s32.totalorder %v27_v8, %v30_v9 }
  0x97   :  { %v32_v11 = vsel %vm31_vm1, 0.90625, %v92_v10 }
  0x98   :  { %v33_v14 = vmul.f32 %v32_v11, %v18_v5 }
  0x9a   :  { %v34_v15 = vsel %vm14_vm0, %v33_v14, 0.0 }
  0x9f   :  { %v78_v12 = vpop.eup %77 }
  0xa0   :  { %v21_v13 = vsel %vm14_vm0, %v78_v12, 0.0 }
  0xa1   :  { %22 = vadd.xlane.f32.xlu1 %v21_v13 }
  0xa5   :  { %35 = vadd.xlane.f32.xlu1 %v34_v15 }
 0x12a   :  { %v23_v16 = vpop.xlane.xlu1 %22 }
 0x12b   :  { %79 = vlog2.f32 %v23_v16 }
 0x12e   :  { %v36_v19 = vpop.xlane.xlu1 %35 }
 0x138   :  { %v80_v17 = vpop.eup %79 }
 0x139   :  { %v25_v18 = vmul.f32 0.6931472, %v80_v17 }
 0x13b   :  { %v37_v20 = vsub.f32 %v36_v19, %v25_v18 }
 0x13d   :  { %v46_v21 = vsel %vm45_vm2, %v37_v20, 0.0 }
 0x13e   :  { %47 = vadd.xlane.f32.xlu1 %v46_v21 }
 0x1c7   :  { %v48_v22 = vpop.xlane.xlu1 %47 }
 0x1c8   :  { %v49_v23 = vrot.slane %v48_v22, 4 }
 0x1ca   :  { %v50_v24 = vadd.f32 %v49_v23, %v48_v22 }
 0x1cc   :  { %v51_v25 = vrot.slane %v50_v24, 2 }
 0x1ce   :  { %v52_v26 = vadd.f32 %v51_v25, %v50_v24 }
 0x1d0   :  { %v53_v27 = vrot.slane %v52_v26, 1 }
 0x1d2   :  { %v54_v28 = vadd.f32 %v53_v27, %v52_v26 }
 0x1d4   :  { %71 = vpush %v54_v28 }
 0x205   :  { %s72_s0 = spop %71 }
 0x206   :  { %57 = sst [smem:[#allocation2]] %s72_s0 }
 0x207   :  { %65 = dma.smem_to_hbm %s93_s1, 16, %s123_s2, [#allocation3]  }
 0x208   :  { %89 = dma.done.wait [#allocation3], 16  }
 0x209   :  { %90 = vsyncadd [#allocation3], 4294967280 }
 0x20a   :  { %69 = sfence }
 0x20b   :  { %70 = vsyncpa [#allocation3], 1 }

</bundles_post_ra>
